<compile_context>
chip_gen: v7x
topology: tpu7x:2x2x1
jax: 0.10.0
libtpu: 0.0.40
codegen_flags: <defaults>
</compile_context>

<pallas_src>
import jax
import jax.numpy as jnp
from jax.experimental import pallas as pl
from jax.experimental.pallas import tpu as pltpu


# ----------------------------- Pallas kernel -------------------------------

def _make_kernel(num_hidden, H, C):
    """Builds the fused-MLP kernel body (layer count baked in statically)."""

    def kernel(*refs):
        if num_hidden > 0:
            x_ref, w_in_ref, wh_ref, w_out_ref, b_ref, o_ref = refs
        else:
            x_ref, w_in_ref, w_out_ref, b_ref, o_ref = refs
            wh_ref = None

        # Input layer: Linear + ReLU. bf16 x bf16 -> f32 accumulation on MXU.
        h = jnp.dot(x_ref[...].astype(jnp.bfloat16), w_in_ref[...],
                    preferred_element_type=jnp.float32)
        h = jnp.maximum(h + b_ref[0:1, 0:H], 0.0)

        # Hidden layers (statically unrolled; wh_ref[l] is a free static view).
        for l in range(num_hidden):
            h = jnp.dot(h.astype(jnp.bfloat16), wh_ref[l],
                        preferred_element_type=jnp.float32)
            h = jnp.maximum(h + b_ref[l + 1:l + 2, 0:H], 0.0)

        # Output layer: Linear + sigmoid.
        y = jnp.dot(h.astype(jnp.bfloat16), w_out_ref[...],
                    preferred_element_type=jnp.float32)
        y = y + b_ref[num_hidden + 1:num_hidden + 2, 0:C]
        o_ref[...] = jax.nn.sigmoid(y).astype(o_ref.dtype)

    return kernel


# ----------------------------- Param packing (one-time) ---------------------

def init_params(key, input_size, num_hidden_layers, hidden_size, num_classes):
    """Mimics nn.Linear's U(-1/sqrt(fan_in), 1/sqrt(fan_in)).

    Weights stored as (in, out) -- transpose of PyTorch's (out, in) -- so the
    kernel computes x @ W directly.
    """
    params = []
    dims = [input_size] + [hidden_size] * (num_hidden_layers + 1) + [num_classes]
    for i in range(len(dims) - 1):
        fan_in, fan_out = dims[i], dims[i + 1]
        key, kw, kb = jax.random.split(key, 3)
        bound = 1.0 / float(jnp.sqrt(jnp.float32(fan_in)))
        w = jax.random.uniform(kw, (fan_in, fan_out), jnp.float32, -bound, bound)
        b = jax.random.uniform(kb, (fan_out,), jnp.float32, -bound, bound)
        params.append((w, b))
    return params


def prepare_params(params):
    """One-time packing OUTSIDE the jitted forward.

    Returns (w_in, wh, w_out, b_pack):
      w_in   : (K, H)  bf16
      wh     : (num_hidden, H, H) bf16, or None if num_hidden == 0
      w_out  : (H, C)  bf16
      b_pack : (num_layers, max(H, C)) f32, row l = layer-l bias zero-padded
    """
    num_layers = len(params)
    num_hidden = num_layers - 2
    H = params[0][0].shape[1]
    C = params[-1][0].shape[1]
    max_n = max(H, C)

    w_in = params[0][0].astype(jnp.bfloat16)
    w_out = params[-1][0].astype(jnp.bfloat16)
    wh = None
    if num_hidden > 0:
        wh = jnp.stack([w.astype(jnp.bfloat16) for (w, _) in params[1:-1]])

    b_rows = [jnp.pad(b.astype(jnp.float32), (0, max_n - b.shape[0]))
              for (_, b) in params]
    b_pack = jnp.stack(b_rows)
    return (w_in, wh, w_out, b_pack)


# ----------------------------- Wrapper --------------------------------------

_TM = 256                       # batch tile (MXU-native on v6e/v7x)
_GRID_BATCH_THRESHOLD = 2 * _TM  # below this, gridless whole-array call


def _round_up(n, m):
    return ((n + m - 1) // m) * m


def fused_mlp_pallas(x2d, packed):
    """x2d: (B, K) f32; packed: output of prepare_params()."""
    w_in, wh, w_out, b_pack = packed
    B, K = x2d.shape
    H = w_in.shape[1]
    C = w_out.shape[1]
    num_hidden = 0 if wh is None else wh.shape[0]

    kernel = _make_kernel(num_hidden, H, C)
    weight_args = [w_in] + ([wh] if num_hidden > 0 else []) + [w_out, b_pack]

    if B < _GRID_BATCH_THRESHOLD:
        # Gridless: everything whole-array resident in VMEM, activations stay
        # on-chip as values, no per-call padding or output slicing.
        args = [x2d] + weight_args
        return pl.pallas_call(
            kernel,
            out_shape=jax.ShapeDtypeStruct((B, C), jnp.float32),
            in_specs=[pl.BlockSpec(memory_space=pltpu.MemorySpace.VMEM)
                      for _ in args],
            out_specs=pl.BlockSpec(memory_space=pltpu.MemorySpace.VMEM),
        )(*args)

    # Batch-tiled grid: weights mapped to constant block (stay VMEM-resident),
    # batch axis marked 'parallel' so v7x shards it across its two TensorCores.
    tm = _TM
    b_pad = _round_up(B, tm)
    x_p = jnp.pad(x2d, ((0, b_pad - B), (0, 0))) if b_pad != B else x2d

    in_specs = [pl.BlockSpec((tm, K), lambda i: (i, 0)),
                pl.BlockSpec(w_in.shape, lambda i: (0, 0))]
    if num_hidden > 0:
        in_specs.append(pl.BlockSpec(wh.shape, lambda i: (0, 0, 0)))
    in_specs += [pl.BlockSpec(w_out.shape, lambda i: (0, 0)),
                 pl.BlockSpec(b_pack.shape, lambda i: (0, 0))]

    out = pl.pallas_call(
        kernel,
        out_shape=jax.ShapeDtypeStruct((b_pad, C), jnp.float32),
        grid=(b_pad // tm,),
        in_specs=in_specs,
        out_specs=pl.BlockSpec((tm, C), lambda i: (i, 0)),
        compiler_params=pltpu.CompilerParams(
            dimension_semantics=("parallel",)),
    )(x_p, *weight_args)
    return out[:B] if b_pad != B else out


def neural_net_forward(x, packed):
    """x: (B, C, H, W) or (B, input_size); packed: prepare_params() output."""
    B = x.shape[0]
    h = x.reshape(B, -1).astype(jnp.float32)      # x.view(x.size(0), -1)
    return fused_mlp_pallas(h, packed)


# ----------------------------- Pure-JAX reference ----------------------------

def reference_forward(x, params):
    B = x.shape[0]
    h = x.reshape(B, -1).astype(jnp.float32)
    for i, (w, b) in enumerate(params):
        h = h @ w + b
        if i < len(params) - 1:
            h = jnp.maximum(h, 0.0)
    return jax.nn.sigmoid(h)


# --------------------------------- Main --------------------------------------

if __name__ == "__main__":
    batch, Cc, Hh, Ww = 2, 4, 16, 16
    input_size = Cc * Hh * Ww            # 1024
    num_hidden_layers = 2
    hidden_size = 32
    num_classes = 8

    key = jax.random.PRNGKey(0)
    key, kx = jax.random.split(key)
    x = jax.random.normal(kx, (batch, Cc, Hh, Ww), jnp.float32)

    params = init_params(key, input_size, num_hidden_layers,
                         hidden_size, num_classes)
    packed = prepare_params(params)       # one-time packing, outside jit

    fwd = jax.jit(neural_net_forward)

    # Small batch -> gridless whole-array path.
    out = jax.block_until_ready(fwd(x, packed))
    ref = reference_forward(x, params)
    assert out.shape == (batch, num_classes)
    assert bool(jnp.all(jnp.isfinite(out)))
    assert bool(jnp.all((out >= 0.0) & (out <= 1.0)))       # sigmoid range
    assert float(jnp.max(jnp.abs(out - ref))) < 3e-2        # bf16 weights

    # Larger batch -> batch-tiled 'parallel' grid path (v7x megacore).
    big_batch = 512
    key, kb = jax.random.split(key)
    xb = jax.random.normal(kb, (big_batch, Cc, Hh, Ww), jnp.float32)
    outb = jax.block_until_ready(fwd(xb, packed))
    refb = reference_forward(xb, params)
    assert outb.shape == (big_batch, num_classes)
    assert bool(jnp.all(jnp.isfinite(outb)))
    assert float(jnp.max(jnp.abs(outb - refb))) < 3e-2

    print("KERNEL_OK")
</pallas_src>

<mosaic_0001>
module attributes {stable_mosaic.version = 11 : i64} {
  func.func @kernel(%arg0: memref<2x1024xf32, #tpu.memory_space<vmem>>, %arg1: memref<1024x32xbf16, #tpu.memory_space<vmem>>, %arg2: memref<2x32x32xbf16, #tpu.memory_space<vmem>>, %arg3: memref<32x8xbf16, #tpu.memory_space<vmem>>, %arg4: memref<4x32xf32, #tpu.memory_space<vmem>>, %arg5: memref<2x8xf32, #tpu.memory_space<vmem>>) attributes {dimension_semantics = [], scalar_prefetch = 0 : i64, scratch_operands = 0 : i64, tpu.core_type = #tpu.core_type<tc>} {
    %c0 = arith.constant 0 : index
    %c0_0 = arith.constant 0 : index
    %0 = vector.load %arg0[%c0, %c0_0] : memref<2x1024xf32, #tpu.memory_space<vmem>>, vector<2x1024xf32>
    %1 = arith.truncf %0 : vector<2x1024xf32> to vector<2x1024xbf16>
    %c0_1 = arith.constant 0 : index
    %c0_2 = arith.constant 0 : index
    %2 = vector.load %arg1[%c0_1, %c0_2] : memref<1024x32xbf16, #tpu.memory_space<vmem>>, vector<1024x32xbf16>
    %cst = arith.constant dense<0.000000e+00> : vector<2x32xf32>
    %3 = tpu.matmul %1, %2, %cst {dimension_numbers = #tpu.dot_dimension_numbers<[1], [0], [0], [1], [0, 0, 1, 1], [], []>} : vector<2x1024xbf16>, vector<1024x32xbf16>, vector<2x32xf32> -> vector<2x32xf32>
    %c0_3 = arith.constant 0 : index
    %c0_4 = arith.constant 0 : index
    %4 = vector.load %arg4[%c0_3, %c0_4] : memref<4x32xf32, #tpu.memory_space<vmem>>, vector<1x32xf32>
    %5 = vector.broadcast %4 : vector<1x32xf32> to vector<2x32xf32>
    %6 = arith.addf %3, %5 : vector<2x32xf32>
    %cst_5 = arith.constant 0.000000e+00 : f32
    %7 = vector.broadcast %cst_5 : f32 to vector<2x32xf32>
    %8 = arith.maximumf %6, %7 : vector<2x32xf32>
    %9 = arith.truncf %8 : vector<2x32xf32> to vector<2x32xbf16>
    %c0_6 = arith.constant 0 : index
    %c0_7 = arith.constant 0 : index
    %c0_8 = arith.constant 0 : index
    %10 = vector.load %arg2[%c0_6, %c0_7, %c0_8] : memref<2x32x32xbf16, #tpu.memory_space<vmem>>, vector<1x32x32xbf16>
    %11 = vector.shape_cast %10 : vector<1x32x32xbf16> to vector<32x32xbf16>
    %cst_9 = arith.constant dense<0.000000e+00> : vector<2x32xf32>
    %12 = tpu.matmul %9, %11, %cst_9 {dimension_numbers = #tpu.dot_dimension_numbers<[1], [0], [0], [1], [0, 0, 1, 1], [], []>} : vector<2x32xbf16>, vector<32x32xbf16>, vector<2x32xf32> -> vector<2x32xf32>
    %c1 = arith.constant 1 : index
    %c0_10 = arith.constant 0 : index
    %13 = vector.load %arg4[%c1, %c0_10] : memref<4x32xf32, #tpu.memory_space<vmem>>, vector<1x32xf32>
    %14 = vector.broadcast %13 : vector<1x32xf32> to vector<2x32xf32>
    %15 = arith.addf %12, %14 : vector<2x32xf32>
    %cst_11 = arith.constant 0.000000e+00 : f32
    %16 = vector.broadcast %cst_11 : f32 to vector<2x32xf32>
    %17 = arith.maximumf %15, %16 : vector<2x32xf32>
    %18 = arith.truncf %17 : vector<2x32xf32> to vector<2x32xbf16>
    %c1_12 = arith.constant 1 : index
    %c0_13 = arith.constant 0 : index
    %c0_14 = arith.constant 0 : index
    %19 = vector.load %arg2[%c1_12, %c0_13, %c0_14] : memref<2x32x32xbf16, #tpu.memory_space<vmem>>, vector<1x32x32xbf16>
    %20 = vector.shape_cast %19 : vector<1x32x32xbf16> to vector<32x32xbf16>
    %cst_15 = arith.constant dense<0.000000e+00> : vector<2x32xf32>
    %21 = tpu.matmul %18, %20, %cst_15 {dimension_numbers = #tpu.dot_dimension_numbers<[1], [0], [0], [1], [0, 0, 1, 1], [], []>} : vector<2x32xbf16>, vector<32x32xbf16>, vector<2x32xf32> -> vector<2x32xf32>
    %c2 = arith.constant 2 : index
    %c0_16 = arith.constant 0 : index
    %22 = vector.load %arg4[%c2, %c0_16] : memref<4x32xf32, #tpu.memory_space<vmem>>, vector<1x32xf32>
    %23 = vector.broadcast %22 : vector<1x32xf32> to vector<2x32xf32>
    %24 = arith.addf %21, %23 : vector<2x32xf32>
    %cst_17 = arith.constant 0.000000e+00 : f32
    %25 = vector.broadcast %cst_17 : f32 to vector<2x32xf32>
    %26 = arith.maximumf %24, %25 : vector<2x32xf32>
    %27 = arith.truncf %26 : vector<2x32xf32> to vector<2x32xbf16>
    %c0_18 = arith.constant 0 : index
    %c0_19 = arith.constant 0 : index
    %28 = vector.load %arg3[%c0_18, %c0_19] : memref<32x8xbf16, #tpu.memory_space<vmem>>, vector<32x8xbf16>
    %cst_20 = arith.constant dense<0.000000e+00> : vector<2x8xf32>
    %29 = tpu.matmul %27, %28, %cst_20 {dimension_numbers = #tpu.dot_dimension_numbers<[1], [0], [0], [1], [0, 0, 1, 1], [], []>} : vector<2x32xbf16>, vector<32x8xbf16>, vector<2x8xf32> -> vector<2x8xf32>
    %c3 = arith.constant 3 : index
    %c0_21 = arith.constant 0 : index
    %30 = vector.load %arg4[%c3, %c0_21] : memref<4x32xf32, #tpu.memory_space<vmem>>, vector<1x8xf32>
    %31 = vector.broadcast %30 : vector<1x8xf32> to vector<2x8xf32>
    %32 = arith.addf %29, %31 : vector<2x8xf32>
    %33 = arith.negf %32 : vector<2x8xf32>
    %34 = math.exp %33 : vector<2x8xf32>
    %cst_22 = arith.constant 1.000000e+00 : f32
    %35 = vector.broadcast %cst_22 : f32 to vector<2x8xf32>
    %36 = arith.addf %35, %34 : vector<2x8xf32>
    %37 = arith.divf %35, %36 : vector<2x8xf32>
    %c0_23 = arith.constant 0 : index
    %c0_24 = arith.constant 0 : index
    %38 = vector.load %arg5[%c0_23, %c0_24] : memref<2x8xf32, #tpu.memory_space<vmem>>, vector<2x8xf32>
    tpu.vector_store %arg5[%c0_23, %c0_24], %37 {strides = array<i32>} : memref<2x8xf32, #tpu.memory_space<vmem>>, vector<2x8xf32>,
    return
  }
}

</mosaic_0001>

<bundles_post_ra>
// kernel: neural_net_forward.1
= control target key start
LH: loop header
LB: loop body
LE: loop exit
PB: predicated region body
PF: predicated region fallthrough
CT: control target
= control target key end

     0   :  { %v30_v28 = vlaneseq  ;;  %v1282_v36 = vmov 1983009808   ;;  %s1568_s0 = inlined_call_operand.vmem [shape: f32[2,1024], index: 0, kind: input, shape index: {}]   ;;  %s1569_s1 = inlined_call_operand.vmem [shape: bf16[1024,32], index: 1, kind: input, shape index: {}]   ;;  %s1570_s2 = inlined_call_operand.vmem [shape: bf16[2,32,32], index: 2, kind: input, shape index: {}]   ;;  %s1571_s3 = inlined_call_operand.vmem [shape: bf16[32,8], index: 3, kind: input, shape index: {}]   ;;  %s1572_s4 = inlined_call_operand.vmem [shape: f32[4,32], index: 4, kind: input, shape index: {}]   ;;  %s1573_s5 = inlined_call_operand.hbm [shape: f32[2,8], index: 5, kind: output, shape index: {}]  }
   0x1   :  { %v1182_v0 = vld [vmem:[%s1569_s1 + $0x40] sm:$0xff]   ;;  %v1186_v4 = vld [vmem:[%s1569_s1 + $0x48] sm:$0xff]   ;;  %v1190_v8 = vld [vmem:[%s1569_s1 + $0x50] sm:$0xff]   ;;  %v28_v37 = vunpack.c.l.s4 %v1282_v36 }
   0x2   :  { %v1183_v1 = vld [vmem:[%s1569_s1 + $0xc0] sm:$0xff]   ;;  %1057 = vmatprep.subr.bf16.mxu0 %v1182_v0  ;;  %v1187_v5 = vld [vmem:[%s1569_s1 + $0xc8] sm:$0xff]   ;;  %v1191_v9 = vld [vmem:[%s1569_s1 + $0xd0] sm:$0xff]   ;;  %v31_v33 = vshrl.u32 %v30_v28, 7 }
   0x3   :  { %v1184_v2 = vld [vmem:[%s1569_s1] sm:$0xff]   ;;  %1079 = vmatprep.subr.bf16.mxu1 %v1183_v1  ;;  %v1188_v6 = vld [vmem:[%s1569_s1 + $0x8] sm:$0xff]   ;;  %v1192_v10 = vld [vmem:[%s1569_s1 + $0x10] sm:$0xff]   ;;  %v29_v39 = vunpack.c.0.s8 %v28_v37 }
   0x4   :  { %v1185_v3 = vld [vmem:[%s1569_s1 + $0x80] sm:$0xff]   ;;  %1058 = vmatpush3.bf16.msra.mxu0 %v1184_v2  ;;  %v1189_v7 = vld [vmem:[%s1569_s1 + $0x88] sm:$0xff]   ;;  %v1193_v11 = vld [vmem:[%s1569_s1 + $0x90] sm:$0xff]  }
   0x5   :  { %1080 = vmatpush3.bf16.msra.mxu1 %v1185_v3  ;;  %1059 = vmatprep.subr.bf16.mxu0 %v1186_v4  ;;  %v1194_v12 = vld [vmem:[%s1569_s1 + $0x58] sm:$0xff]   ;;  %v1198_v16 = vld [vmem:[%s1569_s1 + $0x60] sm:$0xff]   ;;  %v1202_v20 = vld [vmem:[%s1569_s1 + $0x68] sm:$0xff]   ;;  %v1421_v41 = vsub.s32 %v29_v39, %v31_v33 }
   0x6   :  { %1081 = vmatprep.subr.bf16.mxu1 %v1187_v5  ;;  %v1195_v13 = vld [vmem:[%s1569_s1 + $0xd8] sm:$0xff]   ;;  %v1199_v17 = vld [vmem:[%s1569_s1 + $0xe0] sm:$0xff]   ;;  %v1203_v21 = vld [vmem:[%s1569_s1 + $0xe8] sm:$0xff]  }
   0x7   :  { %v1196_v14 = vld [vmem:[%s1569_s1 + $0x18] sm:$0xff]   ;;  %v1200_v18 = vld [vmem:[%s1569_s1 + $0x20] sm:$0xff]   ;;  %v1204_v22 = vld [vmem:[%s1569_s1 + $0x28] sm:$0xff]  }
   0x8   :  { %1060 = vmatpush3.bf16.msra.mxu0 %v1188_v6  ;;  %v1197_v15 = vld [vmem:[%s1569_s1 + $0x98] sm:$0xff]   ;;  %v1201_v19 = vld [vmem:[%s1569_s1 + $0xa0] sm:$0xff]   ;;  %v1205_v23 = vld [vmem:[%s1569_s1 + $0xa8] sm:$0xff]  }
   0x9   :  { %1082 = vmatpush3.bf16.msra.mxu1 %v1189_v7  ;;  %1061 = vmatprep.subr.bf16.mxu0 %v1190_v8  ;;  %v1206_v24 = vld [vmem:[%s1569_s1 + $0x70] sm:$0xff]   ;;  %v1210_v29 = vld [vmem:[%s1569_s1 + $0x78] sm:$0xff]   ;;  %v22_v34 = vld [vmem:[%s1568_s0] sm:$0xff] }
   0xa   :  { %1083 = vmatprep.subr.bf16.mxu1 %v1191_v9  ;;  %v1207_v25 = vld [vmem:[%s1569_s1 + $0xf0] sm:$0xff]   ;;  %v1211_v30 = vld [vmem:[%s1569_s1 + $0xf8] sm:$0xff]   ;;  %v1215_v35 = vld [vmem:[%s1569_s1 + $0x140] sm:$0xff]   ;;  %v26_v40 = vcombine.high %v22_v34, %v22_v34  ;;  %v33_v42 = vrot.slane %v22_v34, %v1421_v41 }
   0xb   :  { %v1208_v26 = vld [vmem:[%s1569_s1 + $0x30] sm:$0xff]   ;;  %v1212_v31 = vld [vmem:[%s1569_s1 + $0x38] sm:$0xff]   ;;  %v1216_v38 = vld [vmem:[%s1569_s1 + $0x1c0] sm:$0xff]  }
   0xc   :  { %1062 = vmatpush3.bf16.msra.mxu0 %v1192_v10  ;;  %v1209_v27 = vld [vmem:[%s1569_s1 + $0xb0] sm:$0xff]   ;;  %v1213_v32 = vld [vmem:[%s1569_s1 + $0xb8] sm:$0xff]   ;;  %v40_v43 = vrot.slane %v26_v40, %v1421_v41  ;;  %v41_v44 = vcombine.high %v33_v42, %v33_v42  ;;  %v1217_v46 = vld [vmem:[%s1569_s1 + $0x100] sm:$0xff]   ;;  %v68_v47 = vpack.c.bf16 %v33_v42, %v33_v42 }
   0xd   :  { %1084 = vmatpush3.bf16.msra.mxu1 %v1193_v11  ;;  %1063 = vmatprep.subr.bf16.mxu0 %v1194_v12  ;;  %v1218_v49 = vld [vmem:[%s1569_s1 + $0x180] sm:$0xff]   ;;  %v1219_v52 = vld [vmem:[%s1569_s1 + $0x148] sm:$0xff]   ;;  %v1223_v56 = vld [vmem:[%s1569_s1 + $0x150] sm:$0xff]  }
   0xe   :  { %1085 = vmatprep.subr.bf16.mxu1 %v1195_v13  ;;  %v42_v45 = vcombine.high %v40_v43, %v40_v43  ;;  %v70_v48 = vpack.c.bf16 %v40_v43, %v40_v43  ;;  %v69_v50 = vpack.c.bf16 %v41_v44, %v41_v44  ;;  %v1220_v53 = vld [vmem:[%s1569_s1 + $0x1c8] sm:$0xff]   ;;  %v1224_v57 = vld [vmem:[%s1569_s1 + $0x1d0] sm:$0xff]   ;;  %v1227_v60 = vld [vmem:[%s1569_s1 + $0x158] sm:$0xff]  }
   0xf   :  { %v1221_v54 = vld [vmem:[%s1569_s1 + $0x108] sm:$0xff]   ;;  %v1225_v58 = vld [vmem:[%s1569_s1 + $0x110] sm:$0xff]   ;;  %v1228_v61 = vld [vmem:[%s1569_s1 + $0x1d8] sm:$0xff]  }
  0x10   :  { %1064 = vmatpush3.bf16.msra.mxu0 %v1196_v14  ;;  %v71_v51 = vpack.c.bf16 %v42_v45, %v42_v45  ;;  %625 = vmatprep.mubr.bf16.mxu0 %v69_v50  ;;  %v1222_v55 = vld [vmem:[%s1569_s1 + $0x188] sm:$0xff]   ;;  %v1226_v59 = vld [vmem:[%s1569_s1 + $0x190] sm:$0xff]   ;;  %v1229_v62 = vld [vmem:[%s1569_s1 + $0x118] sm:$0xff]  }
  0x11   :  { %1086 = vmatpush3.bf16.msra.mxu1 %v1197_v15  ;;  %1065 = vmatprep.subr.bf16.mxu0 %v1198_v16  ;;  %v1230_v63 = vld [vmem:[%s1569_s1 + $0x198] sm:$0xff]   ;;  %v1231_v0 = vld [vmem:[%s1569_s1 + $0x160] sm:$0xff]   ;;  %v1235_v4 = vld [vmem:[%s1569_s1 + $0x168] sm:$0xff]  }
  0x12   :  { %1087 = vmatprep.subr.bf16.mxu1 %v1199_v17  ;;  %665 = vmatprep.mubr.bf16.mxu1 %v71_v51  ;;  %v1232_v1 = vld [vmem:[%s1569_s1 + $0x1e0] sm:$0xff]   ;;  %v1236_v5 = vld [vmem:[%s1569_s1 + $0x1e8] sm:$0xff]   ;;  %v1239_v8 = vld [vmem:[%s1569_s1 + $0x170] sm:$0xff]  }
  0x13   :  { %v1233_v2 = vld [vmem:[%s1569_s1 + $0x120] sm:$0xff]   ;;  %v1237_v6 = vld [vmem:[%s1569_s1 + $0x128] sm:$0xff]   ;;  %v1240_v9 = vld [vmem:[%s1569_s1 + $0x1f0] sm:$0xff]  }
  0x14   :  { %1066 = vmatpush3.bf16.msra.mxu0 %v1200_v18  ;;  %v1234_v3 = vld [vmem:[%s1569_s1 + $0x1a0] sm:$0xff]   ;;  %v1238_v7 = vld [vmem:[%s1569_s1 + $0x1a8] sm:$0xff]   ;;  %v1241_v11 = vld [vmem:[%s1569_s1 + $0x130] sm:$0xff]  }
  0x15   :  { %1088 = vmatpush3.bf16.msra.mxu1 %v1201_v19  ;;  %1067 = vmatprep.subr.bf16.mxu0 %v1202_v20  ;;  %v23_v10 = vld [vmem:[%s1568_s0 + $0x8] sm:$0xff]  ;;  %v1242_v12 = vld [vmem:[%s1569_s1 + $0x1b0] sm:$0xff]   ;;  %v1243_v15 = vld [vmem:[%s1569_s1 + $0x178] sm:$0xff]  }
  0x16   :  { %1089 = vmatprep.subr.bf16.mxu1 %v1203_v21  ;;  %v50_v13 = vrot.slane %v23_v10, %v1421_v41  ;;  %v43_v14 = vcombine.high %v23_v10, %v23_v10  ;;  %v1244_v16 = vld [vmem:[%s1569_s1 + $0x1f8] sm:$0xff]  }
  0x18   :  { %1068 = vmatpush3.bf16.msra.mxu0 %v1204_v22  ;;  %v58_v17 = vcombine.high %v50_v13, %v50_v13  ;;  %v57_v18 = vrot.slane %v43_v14, %v1421_v41 }
  0x19   :  { %1090 = vmatpush3.bf16.msra.mxu1 %v1205_v23  ;;  %1069 = vmatprep.subr.bf16.mxu0 %v1206_v24 }
  0x1a   :  { %1091 = vmatprep.subr.bf16.mxu1 %v1207_v25 }
  0x1c   :  { %1070 = vmatpush3.bf16.msra.mxu0 %v1208_v26 }
  0x1d   :  { %1092 = vmatpush3.bf16.msra.mxu1 %v1209_v27  ;;  %1071 = vmatprep.subr.bf16.mxu0 %v1210_v29 }
  0x1e   :  { %1093 = vmatprep.subr.bf16.mxu1 %v1211_v30 }
  0x20   :  { %1072 = vmatpush3.bf16.msra.mxu0 %v1212_v31 }
  0x21   :  { %1094 = vmatpush3.bf16.msra.mxu1 %v1213_v32  ;;  %1101 = vmatprep.subr.bf16.mxu0 %v1215_v35 }
  0x22   :  { %1123 = vmatprep.subr.bf16.mxu1 %v1216_v38 }
  0x23   :  { %626 = vmatmul.mubr.bf16.vlgmr.msra.gmra.mrb[0].mxu0 %v68_v47 }
  0x24   :  { %666 = vmatmul.mubr.bf16.vlgmr.msra.gmra.mrb[0].mxu1 %v70_v48  ;;  %1102 = vmatpush3.bf16.msra.mxu0 %v1217_v46 }
  0x25   :  { %1124 = vmatpush3.bf16.msra.mxu1 %v1218_v49  ;;  %1103 = vmatprep.subr.bf16.mxu0 %v1219_v52 }
  0x26   :  { %1125 = vmatprep.subr.bf16.mxu1 %v1220_v53 }
  0x28   :  { %1104 = vmatpush3.bf16.msra.mxu0 %v1221_v54 }
  0x29   :  { %1126 = vmatpush3.bf16.msra.mxu1 %v1222_v55  ;;  %1105 = vmatprep.subr.bf16.mxu0 %v1223_v56 }
  0x2a   :  { %1127 = vmatprep.subr.bf16.mxu1 %v1224_v57 }
  0x2c   :  { %1106 = vmatpush3.bf16.msra.mxu0 %v1225_v58 }
  0x2d   :  { %1128 = vmatpush3.bf16.msra.mxu1 %v1226_v59  ;;  %1107 = vmatprep.subr.bf16.mxu0 %v1227_v60 }
  0x2e   :  { %1129 = vmatprep.subr.bf16.mxu1 %v1228_v61 }
  0x30   :  { %1108 = vmatpush3.bf16.msra.mxu0 %v1229_v62 }
  0x31   :  { %1130 = vmatpush3.bf16.msra.mxu1 %v1230_v63  ;;  %1109 = vmatprep.subr.bf16.mxu0 %v1231_v0 }
  0x32   :  { %1131 = vmatprep.subr.bf16.mxu1 %v1232_v1 }
  0x34   :  { %1110 = vmatpush3.bf16.msra.mxu0 %v1233_v2 }
  0x35   :  { %1132 = vmatpush3.bf16.msra.mxu1 %v1234_v3  ;;  %1111 = vmatprep.subr.bf16.mxu0 %v1235_v4 }
  0x36   :  { %1133 = vmatprep.subr.bf16.mxu1 %v1236_v5 }
  0x38   :  { %1112 = vmatpush3.bf16.msra.mxu0 %v1237_v6 }
  0x39   :  { %1134 = vmatpush3.bf16.msra.mxu1 %v1238_v7  ;;  %1113 = vmatprep.subr.bf16.mxu0 %v1239_v8 }
  0x3a   :  { %1135 = vmatprep.subr.bf16.mxu1 %v1240_v9 }
  0x3b   :  { %10 = vsyncpa [#allocation3], 0  ;;  %v73_v19 = vpack.c.bf16 %v58_v17, %v58_v17  ;;  %v59_v20 = vcombine.high %v57_v18, %v57_v18  ;;  %v1245_v21 = vld [vmem:[%s1569_s1 + $0x138] sm:$0xff]   ;;  %v72_v24 = vpack.c.bf16 %v50_v13, %v50_v13  ;;  %v74_v25 = vpack.c.bf16 %v57_v18, %v57_v18  ;;  %v1248_v26 = vld [vmem:[%s1570_s2] sm:$0xff]  }
  0x3c   :  { %1114 = vmatpush3.bf16.msra.mxu0 %v1241_v11  ;;  %v1246_v22 = vld [vmem:[%s1569_s1 + $0x1b8] sm:$0xff]   ;;  %v1283_v27 = vmov 0.0   ;;  %v1249_v28 = vld [vmem:[%s1570_s2 + $0x8] sm:$0xff]   ;;  %vm1284_vm0 = vmmov 0   ;;  %v1250_v29 = vld [vmem:[%s1570_s2 + $0x10] sm:$0xff]   ;;  %vm776_vm1 = vcmask 261120  }
  0x3d   :  { %1136 = vmatpush3.bf16.msra.mxu1 %v1242_v12  ;;  %v75_v23 = vpack.c.bf16 %v59_v20, %v59_v20  ;;  %1115 = vmatprep.subr.bf16.mxu0 %v1243_v15  ;;  %v975_v32 = vld [vmem:[%s1572_s4] ss:$0 sm:$0xff]  ;;  %v1251_v57 = vld [vmem:[%s1570_s2 + $0x18] sm:$0xff]   ;;  %v1040_v59 = vld [vmem:[%s1572_s4 + $0x1] ss:$0 sm:$0xff]  ;;  %vm959_vm2 = vcmask 58368  }
  0x3e   :  { %1137 = vmatprep.subr.bf16.mxu1 %v1244_v16  ;;  %705 = vmatprep.mubr.bf16.mxu0 %v73_v19  ;;  %v1252_v58 = vld [vmem:[%s1571_s3] sm:$0xff]   ;;  %v1253_v3 = vld [vmem:[%s1571_s3 + $0x8] sm:$0xff]   ;;  %s1285_s3 = smov [#allocation2]  }
  0x3f   :  { %745 = vmatprep.mubr.bf16.mxu1 %v75_v23  ;;  %v1048_v4 = vld [vmem:[%s1572_s4 + $0x2] ss:$0 sm:$0xff]  ;;  %v1052_v12 = vld [vmem:[%s1572_s4 + $0x3] ss:$0 sm:$0xff]  ;;  %s967_s17 = sshll.u32 %s1285_s3, 4  ;;  %s968_s17 = int_to_ptr.vmem [resolvable:$true] %s967_s17 }
  0x40   :  { %1116 = vmatpush3.bf16.msra.mxu0 %v1245_v21  ;;  %s1258_s18 = scalar_lea.vmem %s968_s17, 32  ;;  %p1263_p1 = scmp.lt.s32.totalorder %s968_s17, %s968_s17 }
  0x41   :  { %1138 = vmatpush3.bf16.msra.mxu1 %v1246_v22  ;;  %1154 = vmatprep.subr.bf16.mxu0 %v1283_v27  ;;  %p1259_p0 = scmp.ne.s32.totalorder %s968_s17, %s1258_s18  ;;  %p1264_p2 = scmp.lt.s32.totalorder %s1258_s18, %s1258_s18 }
  0x42   :  { %1162 = vmatprep.subr.bf16.mxu1 %v1283_v27 }
  0x43   :  { %706 = vmatmul.mubr.bf16.vlgmr.msra.gmra.mrb[4].mxu0 %v72_v24  ;;  %p1265_p3 = por %p1264_p2, %p1263_p1 }
  0x44   :  { %746 = vmatmul.mubr.bf16.vlgmr.msra.gmra.mrb[4].mxu1 %v74_v25  ;;  %1155 = vmatpush3.bf16.msra.mxu0 %v1248_v26 }
  0x45   :  { %1156 = vmatprep.subr.bf16.mxu0 %v1283_v27  ;;  %1158 = vmatprep.mubr.msk.bf16.mxu0 %vm1284_vm0, %v1283_v27  ;;  %p1266_p4 = pnand %p1265_p3, %p1259_p0 }
  0x46   :  { %1166 = vmatprep.mubr.msk.bf16.mxu1 %vm1284_vm0, %v1283_v27  ;;  %1163 = vmatpush3.bf16.msra.mxu1 %v1250_v29 }
  0x47   :  { %1164 = vmatprep.subr.bf16.mxu1 %v1283_v27 }
  0x48   :  { %1157 = vmatpush3.bf16.msra.mxu0 %v1249_v28 }
  0x49   :  { %1170 = vmatprep.subr.bf16.mxu0 %v1283_v27 }
  0x4a   :  { %1165 = vmatpush3.bf16.msra.mxu1 %v1251_v57 }
  0xf6   :  { %v1073_v30 = vpop.f32.mrb[0].mxu0 }
  0xf7   :  { %v1095_v31 = vpop.f32.mrb[0].mxu1  ;;  %v1074_v33 = vpop.f32.mrb[1].mxu0 }
  0xf8   :  { %v1096_v34 = vpop.f32.mrb[1].mxu1  ;;  %v1075_v35 = vadd.f32 %v1074_v33, %v1073_v30  ;;  %v1076_v37 = vpop.f32.mrb[2].mxu0 }
  0xf9   :  { %v1097_v36 = vadd.f32 %v1096_v34, %v1095_v31  ;;  %v1098_v38 = vpop.f32.mrb[2].mxu1  ;;  %v1077_v39 = vpop.f32.mrb[3].mxu0 }
  0xfa   :  { %v1099_v40 = vpop.f32.mrb[3].mxu1  ;;  %v628_v41 = vadd.f32 %v1075_v35, %v975_v32 }
  0xfc   :  { %v668_v42 = vadd.f32 %v1097_v36, %v628_v41 }
 0x116   :  { %v1117_v43 = vpop.f32.mrb[4].mxu0 }
 0x117   :  { %v1139_v44 = vpop.f32.mrb[4].mxu1  ;;  %v1118_v45 = vpop.f32.mrb[5].mxu0 }
 0x118   :  { %v1140_v46 = vpop.f32.mrb[5].mxu1  ;;  %v1119_v47 = vadd.f32 %v1118_v45, %v1117_v43  ;;  %v1120_v49 = vpop.f32.mrb[6].mxu0 }
 0x119   :  { %v1141_v48 = vadd.f32 %v1140_v46, %v1139_v44  ;;  %v1142_v50 = vpop.f32.mrb[6].mxu1  ;;  %v1121_v51 = vpop.f32.mrb[7].mxu0 }
 0x11a   :  { %v1143_v52 = vpop.f32.mrb[7].mxu1  ;;  %v708_v53 = vadd.f32 %v1119_v47, %v668_v42 }
 0x11c   :  { %v748_v54 = vadd.f32 %v1141_v48, %v708_v53 }
 0x11e   :  { %v753_v55 = vmax.f32 %v748_v54, 0.0 }
 0x120   :  { %v754_v56 = vpack.c.bf16 %v753_v55, %v753_v55 }
 0x122   :  { %1159 = vmatmul.mubr.msk.bf16.vlgmr.msra.gmra.mrb[8].mxu0 %vm776_vm1, %v754_v56 }
 0x123   :  { %1174 = vmatprep.mubr.msk.bf16.mxu0 %vm1284_vm0, %v1283_v27  ;;  %1171 = vmatpush3.bf16.msra.mxu0 %v1252_v58 }
 0x124   :  { %1172 = vmatprep.subr.bf16.mxu0 %v1283_v27 }
 0x127   :  { %1173 = vmatpush3.bf16.msra.mxu0 %v1253_v3 }
 0x1f5   :  { %v814_v60 = vpop.f32.mrb[8].mxu0 }
 0x1f6   :  { %v815_v61 = vadd.f32 %v1040_v59, %v814_v60  ;;  %v1160_v62 = vpop.f32.mrb[9].mxu0 }
 0x1f7   :  { %v817_v63 = vpop.f32.mrb[10].mxu0 }
 0x1f8   :  { %v820_v0 = vmax.f32 %v815_v61, 0.0  ;;  %v1161_v1 = vpop.f32.mrb[11].mxu0 }
 0x1fa   :  { %v821_v2 = vpack.c.bf16 %v820_v0, %v820_v0 }
 0x1fc   :  { %1167 = vmatmul.mubr.msk.bf16.vlgmr.msra.gmra.mrb[8].mxu1 %vm776_vm1, %v821_v2 }
 0x2cf   :  { %v881_v5 = vpop.f32.mrb[8].mxu1 }
 0x2d0   :  { %v882_v6 = vadd.f32 %v1048_v4, %v881_v5  ;;  %v1168_v7 = vpop.f32.mrb[9].mxu1 }
 0x2d1   :  { %v884_v8 = vpop.f32.mrb[10].mxu1 }
 0x2d2   :  { %v887_v9 = vmax.f32 %v882_v6, 0.0  ;;  %v1169_v10 = vpop.f32.mrb[11].mxu1 }
 0x2d4   :  { %v888_v11 = vpack.c.bf16 %v887_v9, %v887_v9 }
 0x2d6   :  { %1175 = vmatmul.mubr.msk.bf16.vlgmr.msra.gmra.mrb[12].mxu0 %vm776_vm1, %v888_v11 }
 0x3a9   :  { %v947_v13 = vpop.f32.mrb[12].mxu0 }
 0x3aa   :  { %v948_v14 = vadd.f32 %v1052_v12, %v947_v13  ;;  %v1176_v15 = vpop.f32.mrb[13].mxu0 }
 0x3ab   :  { %v950_v16 = vpop.f32.mrb[14].mxu0 }
 0x3ac   :  { %v1056_v17 = vmul.f32 -1.442695, %v948_v14  ;;  %v1177_v18 = vpop.f32.mrb[15].mxu0 }
 0x3ae   :  { %1254 = vpow2.f32 %v1056_v17 }
 0x3b8   :  { %v1255_v19 = vpop.eup %1254 }
 0x3b9   :  { %v956_v20 = vadd.f32 1.0, %v1255_v19 }
 0x3bb   :  { %1256 = vrcp.f32 %v956_v20 }
 0x3c5   :  { %v1257_v21 = vpop.eup %1256 }
 0x3c6   :  { %960 = vst.msk [vmem:[#allocation2] sm:$0x3] %vm959_vm2, %v1257_v21 }
 0x3c7   :  { %1269 = shalt.err (!%p1266_p4)
}
 0x3c8   :  { %s1270_s20 = scalar_lea.hbm %s1573_s5, 32 }
 0x3c9   :  { %p1271_p5 = scmp.ne.s32.totalorder %s1573_s5, %s1270_s20  ;;  %p1274_p6 = scmp.lt.u32.totalorder %s1270_s20, %s1573_s5 }
 0x3cb   :  { %p1276_p7 = pnand %p1274_p6, %p1271_p5 }
 0x3cd   :  { %1279 = shalt.err (!%p1276_p7)
}
 0x3ce   :  { %970 = dma.vmem_to_hbm [thread:$0]  %s968_s17, 32, %s1573_s5, [#allocation3]  }
 0x3cf   :  { %1280 = dma.done.wait [#allocation3], 32  }
 0x3d0   :  { %1281 = vsyncadd [#allocation3], 4294967264 }
 0x3d1   :  { %974 = vsyncpa [#allocation3], 1 }

</bundles_post_ra>
